<compile_context>
chip_gen: v5e
topology: v5e:2x2
jax: 0.10.0
libtpu: 0.0.40
codegen_flags: <defaults>
</compile_context>

<pallas_src>
import jax
import jax.numpy as jnp
from jax.experimental import pallas as pl
from jax.experimental.pallas import tpu as pltpu


def _compressor_sum_kernel(x_ref, w_ref, out_ref, acc_ref):
    # x_ref  : (tr, Hc*Wc) f32  -- lane-dense block of channel images (rows = b*c)
    # w_ref  : (1,  Hc*Wc) f32  -- flatten(outer(colsum(L), rowsum(R))), resident
    # out_ref: (1, 1)      f32  -- final scalar, SMEM
    # acc_ref: (1,  Hc*Wc) f32  -- VMEM scratch: running column-sum of x rows
    i = pl.program_id(0)

    @pl.when(i == 0)
    def _():
        acc_ref[...] = jnp.zeros_like(acc_ref)

    # Per-block work is only a sublane reduction (pure VPU adds, unmasked lane-dense
    # loads since Hc*Wc is a multiple of 128).  The weight multiply is deferred to
    # the finalize step so it is done once, not once per block.
    acc_ref[...] += jnp.sum(x_ref[...], axis=0, keepdims=True)

    @pl.when(i == pl.num_programs(0) - 1)
    def _():
        out_ref[0, 0] = jnp.sum(acc_ref[...] * w_ref[...])


def compressor_forward(x, labels, lhs, rhs):
    # Mirrors the torch forward's glue; labels are unused there as well.
    del labels
    L = lhs[0]                                # (M, Hc)   (torch.squeeze is a no-op for M,Hc>1)
    R = rhs[0]                                # (Wc, N)
    B, C, Hc, Wc = x.shape
    HW = Hc * Wc

    # The module only touches channels 0, 1, 2 (r, g, b).
    x_rgb = x[:, 0:3]
    BC = B * 3

    # Exact algebraic collapse of  sum_{b,c} sum(L @ X_{bc} @ R):
    #   weight[h, w] = colsum(L)[h] * rowsum(R)[w]        (O(Hc*Wc) work, negligible)
    lcs = jnp.sum(L, axis=0)                               # (Hc,)
    rs = jnp.sum(R, axis=1)                                # (Wc,)
    w2d = (lcs[:, None] * rs[None, :]).reshape(1, HW).astype(jnp.float32)

    # Lane-dense layout: last dim Hc*Wc (= 256 here) is a multiple of 128, so vector
    # loads and the HBM->VMEM DMA are unmasked.
    x2d = x_rgb.reshape(BC, HW).astype(jnp.float32)        # (B*3, Hc*Wc)

    # Row tiling: single grid step for small batches; for large batches stream
    # 512-row blocks through VMEM (double-buffered by the Pallas pipeline).
    TR = 512
    if BC <= TR:
        tr = BC
    else:
        tr = TR
        pad = (-BC) % TR
        if pad:
            # Zero rows do not change the sum.
            x2d = jnp.concatenate([x2d, jnp.zeros((pad, HW), jnp.float32)], axis=0)
    nblk = x2d.shape[0] // tr

    out = pl.pallas_call(
        _compressor_sum_kernel,
        out_shape=jax.ShapeDtypeStruct((1, 1), jnp.float32),
        grid_spec=pltpu.PrefetchScalarGridSpec(
            num_scalar_prefetch=0,
            grid=(nblk,),
            in_specs=[
                pl.BlockSpec((tr, HW), lambda i: (i, 0)),        # streamed x rows
                pl.BlockSpec((1, HW), lambda i: (0, 0)),         # resident weight row
            ],
            out_specs=pl.BlockSpec(
                (1, 1), lambda i: (0, 0), memory_space=pltpu.MemorySpace.SMEM
            ),
            scratch_shapes=[pltpu.VMEM((1, HW), jnp.float32)],   # column-sum accumulator
        ),
        compiler_params=pltpu.CompilerParams(
            dimension_semantics=("arbitrary",)                   # carried accumulator
        ),
    )(x2d, w2d)
    return out[0, 0]


if __name__ == "__main__":
    key = jax.random.PRNGKey(0)
    kx, kl, kr, klab = jax.random.split(key, 4)

    # Small shapes consistent with the module: RGB image compressed to 16x16,
    # decompressed back to 32x32 via low-rank factors.
    B, C, Hc, Wc, M, N = 2, 3, 16, 16, 32, 32

    x = jax.random.normal(kx, (B, C, Hc, Wc), dtype=jnp.float32)
    labels = jax.random.normal(klab, (B, C, M, N), dtype=jnp.float32)  # unused by forward
    lhs = jax.random.normal(kl, (1, M, Hc), dtype=jnp.float32)
    rhs = jax.random.normal(kr, (1, Wc, N), dtype=jnp.float32)

    out = jax.jit(compressor_forward)(x, labels, lhs, rhs)
    jax.block_until_ready(out)

    # Pure-JAX reference of the original (uncollapsed) math:
    #   sum_{b, c in rgb} sum( L @ x[b,c] @ R )
    ref = jnp.sum(jnp.einsum("mh,bchw,wn->bcmn", lhs[0], x[:, 0:3], rhs[0]))
    assert jnp.allclose(out, ref, rtol=1e-3, atol=1e-2), (float(out), float(ref))

    print("KERNEL_OK")
</pallas_src>

<mosaic_0001>
module attributes {stable_mosaic.version = 11 : i64} {
  func.func @_compressor_sum_kernel(%arg0: i32, %arg1: memref<6x256xf32, #tpu.memory_space<vmem>>, %arg2: memref<1x256xf32, #tpu.memory_space<vmem>>, %arg3: memref<1x1xf32, #tpu.memory_space<smem>>, %arg4: memref<1x256xf32, #tpu.memory_space<vmem>>) attributes {dimension_semantics = [#tpu.dimension_semantics<arbitrary>], iteration_bounds = array<i64: 1>, scalar_prefetch = 0 : i64, scratch_operands = 1 : i64, tpu.core_type = #tpu.core_type<tc>, window_params = [{transform_indices = @transform_0, window_bounds = array<i64: 6, 256>}, {pipeline_mode = #tpu.pipeline_mode<synchronous>, transform_indices = @transform_1, window_bounds = array<i64: 1, 256>}, {transform_indices = @transform_2, window_bounds = array<i64: 1, 1>}]} {
    %c0_i32 = arith.constant 0 : i32
    %0 = arith.cmpi eq, %arg0, %c0_i32 : i32
    %1 = arith.extui %0 : i1 to i32
    %c0_i32_0 = arith.constant 0 : i32
    %2 = arith.cmpi ne, %1, %c0_i32_0 : i32
    scf.if %2 {
      %cst_8 = arith.constant 0.000000e+00 : f32
      %12 = vector.broadcast %cst_8 : f32 to vector<1x256xf32>
      %c0_9 = arith.constant 0 : index
      %c0_10 = arith.constant 0 : index
      %13 = vector.load %arg4[%c0_9, %c0_10] : memref<1x256xf32, #tpu.memory_space<vmem>>, vector<1x256xf32>
      tpu.vector_store %arg4[%c0_9, %c0_10], %12 {strides = array<i32>} : memref<1x256xf32, #tpu.memory_space<vmem>>, vector<1x256xf32>,
    } else {
    }
    %c0 = arith.constant 0 : index
    %c0_1 = arith.constant 0 : index
    %3 = vector.load %arg4[%c0, %c0_1] : memref<1x256xf32, #tpu.memory_space<vmem>>, vector<1x256xf32>
    %c0_2 = arith.constant 0 : index
    %c0_3 = arith.constant 0 : index
    %4 = vector.load %arg1[%c0_2, %c0_3] : memref<6x256xf32, #tpu.memory_space<vmem>>, vector<6x256xf32>
    %cst = arith.constant dense<0.000000e+00> : vector<256xf32>
    %5 = vector.multi_reduction <add>, %4, %cst [0] : vector<6x256xf32> to vector<256xf32>
    %6 = vector.shape_cast %5 : vector<256xf32> to vector<1x256xf32>
    %7 = arith.addf %3, %6 : vector<1x256xf32>
    %c0_4 = arith.constant 0 : index
    %c0_5 = arith.constant 0 : index
    %8 = vector.load %arg4[%c0_4, %c0_5] : memref<1x256xf32, #tpu.memory_space<vmem>>, vector<1x256xf32>
    tpu.vector_store %arg4[%c0_4, %c0_5], %7 {strides = array<i32>} : memref<1x256xf32, #tpu.memory_space<vmem>>, vector<1x256xf32>,
    %c0_i32_6 = arith.constant 0 : i32
    %9 = arith.cmpi eq, %arg0, %c0_i32_6 : i32
    %10 = arith.extui %9 : i1 to i32
    %c0_i32_7 = arith.constant 0 : i32
    %11 = arith.cmpi ne, %10, %c0_i32_7 : i32
    scf.if %11 {
      %c0_8 = arith.constant 0 : index
      %c0_9 = arith.constant 0 : index
      %12 = vector.load %arg4[%c0_8, %c0_9] : memref<1x256xf32, #tpu.memory_space<vmem>>, vector<1x256xf32>
      %c0_10 = arith.constant 0 : index
      %c0_11 = arith.constant 0 : index
      %13 = vector.load %arg2[%c0_10, %c0_11] : memref<1x256xf32, #tpu.memory_space<vmem>>, vector<1x256xf32>
      %14 = arith.mulf %12, %13 : vector<1x256xf32>
      %15 = vector.shape_cast %14 : vector<1x256xf32> to vector<1x1x256xf32>
      %cst_12 = arith.constant dense<0.000000e+00> : vector<1xf32>
      %16 = vector.multi_reduction <add>, %15, %cst_12 [1, 2] : vector<1x1x256xf32> to vector<1xf32>
      %17 = vector.shape_cast %16 : vector<1xf32> to vector<1x1x1xf32>
      %18 = vector.extract %17[0, 0, 0] : f32 from vector<1x1x1xf32>
      %c0_13 = arith.constant 0 : index
      %c0_14 = arith.constant 0 : index
      %19 = memref.load %arg3[%c0_13, %c0_14] : memref<1x1xf32, #tpu.memory_space<smem>>
      memref.store %18, %arg3[%c0_13, %c0_14] : memref<1x1xf32, #tpu.memory_space<smem>>
    } else {
    }
    return
  }
  func.func @transform_0(%arg0: i32) -> (i32, i32) {
    %c0_i32 = arith.constant 0 : i32
    %c0_i32_0 = arith.constant 0 : i32
    return %arg0, %c0_i32 : i32, i32
  }
  func.func @transform_1(%arg0: i32) -> (i32, i32) {
    %c0_i32 = arith.constant 0 : i32
    %c0_i32_0 = arith.constant 0 : i32
    %c0_i32_1 = arith.constant 0 : i32
    return %c0_i32, %c0_i32_0 : i32, i32
  }
  func.func @transform_2(%arg0: i32) -> (i32, i32) {
    %c0_i32 = arith.constant 0 : i32
    %c0_i32_0 = arith.constant 0 : i32
    %c0_i32_1 = arith.constant 0 : i32
    return %c0_i32, %c0_i32_0 : i32, i32
  }
}

</mosaic_0001>

<bundles_post_ra>
// kernel: compressor_forward.1
= control target key start
LH: loop header
LB: loop body
LE: loop exit
PB: predicated region body
PF: predicated region fallthrough
CT: control target
= control target key end

     0   :  { %v16_v0 = vlaneseq  ;;  %vm24_vm0 = vcmask 1045504   ;;  %s146_s0 = inlined_call_operand.vmem [shape: f32[6,256], index: 0, kind: input, shape index: {}]   ;;  %s147_s1 = inlined_call_operand.vmem [shape: f32[1,256], index: 1, kind: input, shape index: {}]   ;;  %s148_s2 = inlined_call_operand.hbm [shape: f32[1,1], index: 2, kind: output, shape index: {}]  }
   0x1   :  { %v22_v1 = vld [vmem:[%s146_s0] sm:$0x3f]  ;;  %v23_v2 = vld [vmem:[%s146_s0 + $0x8] sm:$0x3f] }
   0x2   :  { %v25_v3 = vsel %vm24_vm0, %v22_v1, 0.0  ;;  %v32_v4 = vsel %vm24_vm0, %v23_v2, 0.0  ;;  %vm132_vm1 = vcmp.lt.s32.totalorder %v16_v0, 256 }
   0x3   :  { %v26_v6 = vrot.slane %v25_v3, 4  ;;  %v33_v7 = vrot.slane %v32_v4, 4 }
   0x4   :  { %7 = vsyncpa [#allocation4], 0  ;;  %v109_v8 = vmov 0.0   ;;  %vm42_vm2 = vcmask 1040384   ;;  %v55_v23 = vld [vmem:[%s147_s1] sm:$0x3] }
   0x5   :  { %20 = vst.msk [vmem:[#allocation2] sm:$0x3] %vm132_vm1, %v109_v8  ;;  %v27_v9 = vadd.f32 %v26_v6, %v25_v3  ;;  %v34_v10 = vadd.f32 %v33_v7, %v32_v4  ;;  %s81_s1 = sshll.u32 %s148_s2, 4  ;;  %s110_s17 = smov [#allocation3]   ;;  %s82_s1 = int_to_ptr.hbm [resolvable:$true] %s81_s1 }
   0x7   :  { %v28_v11 = vrot.slane %v27_v9, 2  ;;  %v35_v12 = vrot.slane %v34_v10, 2 }
   0x9   :  { %v29_v13 = vadd.f32 %v28_v11, %v27_v9  ;;  %v36_v14 = vadd.f32 %v35_v12, %v34_v10 }
   0xb   :  { %v30_v15 = vrot.slane %v29_v13, 1  ;;  %v37_v16 = vrot.slane %v36_v14, 1 }
   0xc   :  { %v21_v19 = vld [vmem:[#allocation2] sm:$0x3] }
   0xd   :  { %v31_v17 = vadd.f32 %v30_v15, %v29_v13  ;;  %v38_v18 = vadd.f32 %v37_v16, %v36_v14 }
   0xf   :  { %v41_v20 = vrot.slane %v38_v18, 7 }
  0x11   :  { %v43_v21 = vsel %vm42_vm2, %v31_v17, %v41_v20 }
  0x12   :  { %v45_v22 = vadd.f32 %v43_v21, %v21_v19 }
  0x14   :  { %50 = vst.msk [vmem:[#allocation2] sm:$0x3] %vm132_vm1, %v45_v22 }
  0x1b   :  { %v54_v24 = vld [vmem:[#allocation2] sm:$0x3] }
  0x1c   :  { %v56_v25 = vmul.f32 %v55_v23, %v54_v24 }
  0x1e   :  { %v58_v26 = vperm.slane %v56_v25, 0  ;;  %v59_v27 = vperm.slane %v56_v25, 1 }
  0x20   :  { %v62_v28 = vsel %vm42_vm2, %v58_v26, 0.0  ;;  %v63_v29 = vsel %vm42_vm2, %v59_v27, 0.0 }
  0x21   :  { %v64_v30 = vadd.f32 %v63_v29, %v62_v28 }
  0x23   :  { %65 = vadd.xlane.f32.xlu0 %v64_v30 }
  0x96   :  { %v66_v31 = vpop.xlane.xlu0 %65 }
  0x97   :  { %v67_v32 = vrot.slane %v66_v31, 4 }
  0x99   :  { %v68_v33 = vadd.f32 %v67_v32, %v66_v31 }
  0x9b   :  { %v69_v34 = vrot.slane %v68_v33, 2 }
  0x9d   :  { %v70_v35 = vadd.f32 %v69_v34, %v68_v33 }
  0x9f   :  { %v71_v36 = vrot.slane %v70_v35, 1 }
  0xa1   :  { %v72_v37 = vadd.f32 %v71_v36, %v70_v35 }
  0xa3   :  { %91 = vpush %v72_v37 }
  0xd4   :  { %s92_s16 = spop %91 }
  0xd5   :  { %75 = sst [smem:[#allocation3]] %s92_s16 }
  0xd6   :  { %84 = dma.smem_to_hbm %s110_s17, 16, %s82_s1, [#allocation4]  }
  0xd7   :  { %107 = dma.done.wait [#allocation4], 16  }
  0xd8   :  { %108 = vsyncadd [#allocation4], 4294967280 }
  0xd9   :  { %89 = sfence }
  0xda   :  { %90 = vsyncpa [#allocation4], 1 }

</bundles_post_ra>
